<compile_context>
chip_gen: v7x
topology: tpu7x:2x2x1
jax: 0.10.0
libtpu: 0.0.40
codegen_flags: <defaults>
</compile_context>

<pallas_src>
import jax
import jax.numpy as jnp
from jax import lax
from jax.experimental import pallas as pl
from jax.experimental.pallas import tpu as pltpu


def _ds(start, size, stride):
    """pl.ds that only carries a stride when one is actually needed."""
    if size == 1 or stride == 1:
        return pl.ds(start, size)
    return pl.ds(start, size, stride=stride)


def _make_pool_kernel(in_h, in_w, out_h, out_w, kh, kw, sh, sw, pool_type):
    """Kernel over one NCHW block (tc, in_h, in_w) -> (tc, out_h, out_w)."""
    is_avg = (pool_type == 'avg')
    inv_area = 1.0 / float(kh * kw)
    w_eff = in_w - kw + 1                      # == (out_w - 1) * sw + 1

    def kernel(x_ref, o_ref):
        acc_dtype = jnp.float32 if is_avg else x_ref.dtype
        op = jnp.add if is_avg else jnp.maximum

        # ---- H direction: reduce the kh window taps (sublane axis) --------
        if out_h == 1:
            # Window spans all of H: one full-tile reduction, no tap unroll.
            x = x_ref[...].astype(acc_dtype)
            acc_h = (jnp.sum if is_avg else jnp.max)(x, axis=1, keepdims=True)
        elif kh <= 32:
            acc_h = None
            for dh in range(kh):
                tap = x_ref[:, _ds(dh, out_h, sh), :].astype(acc_dtype)
                acc_h = tap if acc_h is None else op(acc_h, tap)
        else:
            # Large windows: keep code size bounded with a fori_loop.
            def h_body(dh, acc):
                tap = x_ref[:, _ds(dh, out_h, sh), :].astype(acc_dtype)
                return op(acc, tap)
            acc0 = x_ref[:, _ds(0, out_h, sh), :].astype(acc_dtype)
            acc_h = lax.fori_loop(1, kh, h_body, acc0)
        # acc_h: (tc, out_h, in_w)

        # ---- W direction: reduce kw taps + pick every sw-th column --------
        if out_w == 1:
            res = (jnp.sum if is_avg else jnp.max)(acc_h, axis=2, keepdims=True)
            if is_avg:
                res = res * inv_area
        elif is_avg:
            # One MXU matmul fuses the kw-tap sum, the strided column
            # selection and the 1/(kh*kw) scale:
            #   P[iw, ow] = inv_area  iff  ow*sw <= iw < ow*sw + kw.
            rows = lax.broadcasted_iota(jnp.int32, (in_w, out_w), 0)
            cols = lax.broadcasted_iota(jnp.int32, (in_w, out_w), 1)
            start = cols * sw
            pool_mat = jnp.where((rows >= start) & (rows < start + kw),
                                 inv_area, 0.0).astype(jnp.float32)
            pool_mat = jnp.broadcast_to(pool_mat[None],
                                        (acc_h.shape[0],) + pool_mat.shape)
            res = jnp.einsum('chw,cwo->cho', acc_h, pool_mat,
                             preferred_element_type=jnp.float32)
        else:
            # Max: kw static lane slices (each covers all output columns at
            # once, accumulated in the native dtype), then a 0/1 selection
            # matmul when the kept columns are strided.
            # TODO(synk): a pathological kw (>64 with out_w > 1) would deserve
            # a fori_loop + dynamic slice instead of a static unroll.
            acc_w = None
            for dw in range(kw):
                part = acc_h[:, :, dw:dw + w_eff]
                acc_w = part if acc_w is None else jnp.maximum(acc_w, part)
            if sw == 1:
                res = acc_w                    # w_eff == out_w already
            else:
                rows = lax.broadcasted_iota(jnp.int32, (w_eff, out_w), 0)
                cols = lax.broadcasted_iota(jnp.int32, (w_eff, out_w), 1)
                sel = jnp.where(rows == cols * sw, 1.0, 0.0).astype(acc_w.dtype)
                sel = jnp.broadcast_to(sel[None], (acc_w.shape[0],) + sel.shape)
                # TODO(synk): selection-by-matmul is exact only for finite
                # values (0 * inf = nan); fine for normal activations.
                res = jnp.einsum('chw,cwo->cho', acc_w, sel,
                                 preferred_element_type=jnp.float32)

        o_ref[...] = res.astype(o_ref.dtype)   # single dense store

    return kernel


def _vmem_capacity_bytes():
    """Generation-aware VMEM capacity (falls back to the smallest part, v7x)."""
    try:
        info = pltpu.get_tpu_info()
        cap = int(getattr(info, 'vmem_capacity_bytes', 0))
        if cap > 0:
            return cap
    except Exception:
        pass
    return 64 * 1024 * 1024


def _per_channel_block_bytes(in_h, in_w, out_h, out_w, itemsize):
    # Double-buffered pipeline blocks (input plane + output plane) ...
    io = 2 * (in_h * in_w + out_h * out_w) * itemsize
    # ... plus in-kernel f32 temporaries: H-reduced accumulator, W-tap /
    # matmul intermediates and the broadcast pooling/selection matrix.
    tmp = 4 * (3 * out_h * in_w + in_w * out_w + out_h * out_w)
    return io + tmp


def _pick_channel_tile(bs, c, per_ch_bytes, budget_bytes):
    """Largest divisor of C whose pipelined block fits the VMEM budget."""
    max_tc = max(1, budget_bytes // per_ch_bytes)
    if max_tc >= c:
        tc = c
    else:
        tc = 1
        for d in range(int(min(max_tc, c)), 0, -1):
            if c % d == 0:
                tc = d
                break
    # v7x has 2 TensorCores/chip: make sure the 'parallel' grid has >= 2 steps
    # so both get work (a single extra step is harmless on v5e/v6e).
    if bs * (c // tc) < 2 and tc % 2 == 0:
        tc //= 2
    return tc


def adaptive_pool2d(x, output_h, output_w, pool_type='avg'):
    """Exact semantics of AdaptivePool2d.forward (NCHW in, NCHW out)."""
    bs, c, in_h, in_w = x.shape

    # Identity path (matches the module's `else` branch).
    if not (in_h > output_h or in_w > output_w):
        return x

    sh = in_h // output_h
    sw = in_w // output_w
    if sh < 1 or sw < 1:
        # nn.AvgPool2d / nn.MaxPool2d reject stride 0; mirror that failure mode.
        raise ValueError(
            "adaptive_pool2d: requested output larger than input along one "
            f"spatial dim (in=({in_h},{in_w}), out=({output_h},{output_w}))")
    kh = in_h - (output_h - 1) * sh
    kw = in_w - (output_w - 1) * sw

    # TODO(synk): integer-dtype average pooling (truncation semantics) is not
    # handled; inputs are assumed floating point, as with the torch module.
    itemsize = jnp.dtype(x.dtype).itemsize
    vmem_cap = _vmem_capacity_bytes()
    # ~1/3 of VMEM per live block: ~21 MiB on v7x (64 MiB), ~42 MiB on
    # v5e/v6e (128 MiB) -- keeps double buffering + compiler scratch alive.
    budget = max(2 * 1024 * 1024, vmem_cap // 3)
    per_ch = _per_channel_block_bytes(in_h, in_w, output_h, output_w, itemsize)
    tc = _pick_channel_tile(bs, c, per_ch, budget)
    num_cb = c // tc

    kernel = _make_pool_kernel(in_h, in_w, output_h, output_w,
                               kh, kw, sh, sw, pool_type)

    need = tc * per_ch + 2 * 1024 * 1024
    vmem_limit = int(min(int(0.85 * vmem_cap), max(32 * 1024 * 1024, need)))

    flops = 2 * bs * c * output_h * output_w * kh * kw
    bytes_accessed = bs * c * (in_h * in_w + output_h * output_w) * itemsize

    return pl.pallas_call(
        kernel,
        out_shape=jax.ShapeDtypeStruct((bs, c, output_h, output_w), x.dtype),
        grid=(bs, num_cb),
        in_specs=[pl.BlockSpec((None, tc, in_h, in_w),
                               lambda b, cb: (b, cb, 0, 0))],
        out_specs=pl.BlockSpec((None, tc, output_h, output_w),
                               lambda b, cb: (b, cb, 0, 0)),
        compiler_params=pltpu.CompilerParams(
            dimension_semantics=("parallel", "parallel"),
            vmem_limit_bytes=vmem_limit),
        cost_estimate=pl.CostEstimate(flops=int(flops), transcendentals=0,
                                      bytes_accessed=int(bytes_accessed)),
    )(x)


def _reference_pool(x, output_h, output_w, pool_type='avg'):
    """Plain-JAX reference of the same semantics (for correctness checks)."""
    bs, c, in_h, in_w = x.shape
    if not (in_h > output_h or in_w > output_w):
        return x
    sh = in_h // output_h
    sw = in_w // output_w
    kh = in_h - (output_h - 1) * sh
    kw = in_w - (output_w - 1) * sw
    outs = []
    for oh in range(output_h):
        row = []
        for ow in range(output_w):
            win = x[:, :, oh * sh: oh * sh + kh, ow * sw: ow * sw + kw]
            if pool_type == 'avg':
                row.append(jnp.mean(win, axis=(2, 3)))
            else:
                row.append(jnp.max(win, axis=(2, 3)))
        outs.append(jnp.stack(row, axis=-1))
    return jnp.stack(outs, axis=-2)


if __name__ == "__main__":
    key = jax.random.PRNGKey(0)
    # Small shapes consistent with the module: batch=2, channels=4, spatial=16x16.
    x = jax.random.normal(key, (2, 4, 16, 16), dtype=jnp.float32)

    # avg pooling 16x16 -> 4x4 (non-overlapping windows)
    y_avg = jax.block_until_ready(adaptive_pool2d(x, 4, 4, pool_type='avg'))
    ref_avg = _reference_pool(x, 4, 4, pool_type='avg')
    assert y_avg.shape == (2, 4, 4, 4)
    assert jnp.allclose(y_avg, ref_avg, atol=1e-5, rtol=1e-5)

    # max pooling 16x16 -> 4x4 (exercises the slice+selection-matmul path)
    y_max = jax.block_until_ready(adaptive_pool2d(x, 4, 4, pool_type='max'))
    ref_max = _reference_pool(x, 4, 4, pool_type='max')
    assert jnp.allclose(y_max, ref_max, atol=1e-6, rtol=1e-6)

    # overlapping-window case: 16x16 -> 5x5 (stride 3, kernel 4)
    y5 = jax.block_until_ready(adaptive_pool2d(x, 5, 5, pool_type='avg'))
    ref5 = _reference_pool(x, 5, 5, pool_type='avg')
    assert y5.shape == (2, 4, 5, 5)
    assert jnp.allclose(y5, ref5, atol=1e-5, rtol=1e-5)

    # global pooling 16x16 -> 1x1 (exercises the axis-reduction fast path)
    y1 = jax.block_until_ready(adaptive_pool2d(x, 1, 1, pool_type='avg'))
    ref1 = _reference_pool(x, 1, 1, pool_type='avg')
    assert y1.shape == (2, 4, 1, 1)
    assert jnp.allclose(y1, ref1, atol=1e-5, rtol=1e-5)

    # identity path (input <= output)
    y_id = jax.block_until_ready(adaptive_pool2d(x, 16, 16, pool_type='avg'))
    assert jnp.array_equal(y_id, x)

    print("KERNEL_OK")
</pallas_src>

<mosaic_0001>
module attributes {stable_mosaic.version = 11 : i64} {
  func.func @kernel(%arg0: i32, %arg1: i32, %arg2: memref<1x4x16x16xf32, #tpu.memory_space<vmem>>, %arg3: memref<1x4x4x4xf32, #tpu.memory_space<vmem>>) attributes {dimension_semantics = [#tpu.dimension_semantics<parallel>, #tpu.dimension_semantics<parallel>], iteration_bounds = array<i64: 2, 1>, scalar_prefetch = 0 : i64, scratch_operands = 0 : i64, tpu.core_type = #tpu.core_type<tc>, window_params = [{transform_indices = @transform_0, window_bounds = array<i64: 1, 4, 16, 16>}, {transform_indices = @transform_1, window_bounds = array<i64: 1, 4, 4, 4>}]} {
    %c0 = arith.constant 0 : index
    %c0_0 = arith.constant 0 : index
    %c0_1 = arith.constant 0 : index
    %c0_2 = arith.constant 0 : index
    %0 = tpu.strided_load %arg2[%c0, %c0_0, %c0_1, %c0_2] {strides = array<i32: 1, 1, 4, 1>} : memref<1x4x16x16xf32, #tpu.memory_space<vmem>>, vector<1x4x4x16xf32>
    %1 = vector.shape_cast %0 : vector<1x4x4x16xf32> to vector<4x4x16xf32>
    %c0_3 = arith.constant 0 : index
    %c0_4 = arith.constant 0 : index
    %c1 = arith.constant 1 : index
    %c0_5 = arith.constant 0 : index
    %2 = tpu.strided_load %arg2[%c0_3, %c0_4, %c1, %c0_5] {strides = array<i32: 1, 1, 4, 1>} : memref<1x4x16x16xf32, #tpu.memory_space<vmem>>, vector<1x4x4x16xf32>
    %3 = vector.shape_cast %2 : vector<1x4x4x16xf32> to vector<4x4x16xf32>
    %4 = arith.addf %1, %3 : vector<4x4x16xf32>
    %c0_6 = arith.constant 0 : index
    %c0_7 = arith.constant 0 : index
    %c2 = arith.constant 2 : index
    %c0_8 = arith.constant 0 : index
    %5 = tpu.strided_load %arg2[%c0_6, %c0_7, %c2, %c0_8] {strides = array<i32: 1, 1, 4, 1>} : memref<1x4x16x16xf32, #tpu.memory_space<vmem>>, vector<1x4x4x16xf32>
    %6 = vector.shape_cast %5 : vector<1x4x4x16xf32> to vector<4x4x16xf32>
    %7 = arith.addf %4, %6 : vector<4x4x16xf32>
    %c0_9 = arith.constant 0 : index
    %c0_10 = arith.constant 0 : index
    %c3 = arith.constant 3 : index
    %c0_11 = arith.constant 0 : index
    %8 = tpu.strided_load %arg2[%c0_9, %c0_10, %c3, %c0_11] {strides = array<i32: 1, 1, 4, 1>} : memref<1x4x16x16xf32, #tpu.memory_space<vmem>>, vector<1x4x4x16xf32>
    %9 = vector.shape_cast %8 : vector<1x4x4x16xf32> to vector<4x4x16xf32>
    %10 = arith.addf %7, %9 : vector<4x4x16xf32>
    %11 = tpu.iota {dimensions = array<i32: 0>} : vector<16x4xi32>
    %12 = tpu.iota {dimensions = array<i32: 1>} : vector<16x4xi32>
    %c4_i32 = arith.constant 4 : i32
    %13 = vector.broadcast %c4_i32 : i32 to vector<16x4xi32>
    %14 = arith.muli %12, %13 : vector<16x4xi32>
    %15 = arith.cmpi sge, %11, %14 : vector<16x4xi32>
    %c4_i32_12 = arith.constant 4 : i32
    %16 = vector.broadcast %c4_i32_12 : i32 to vector<16x4xi32>
    %17 = arith.addi %14, %16 : vector<16x4xi32>
    %18 = arith.cmpi slt, %11, %17 : vector<16x4xi32>
    %19 = arith.andi %15, %18 : vector<16x4xi1>
    %cst = arith.constant 6.250000e-02 : f32
    %cst_13 = arith.constant 0.000000e+00 : f32
    %20 = vector.broadcast %cst : f32 to vector<16x4xf32>
    %21 = vector.broadcast %cst_13 : f32 to vector<16x4xf32>
    %22 = arith.select %19, %20, %21 : vector<16x4xi1>, vector<16x4xf32>
    %23 = vector.shape_cast %22 : vector<16x4xf32> to vector<1x16x4xf32>
    %24 = vector.shape_cast %23 : vector<1x16x4xf32> to vector<1x16x4xf32>
    %25 = vector.broadcast %24 : vector<1x16x4xf32> to vector<4x16x4xf32>
    "tpu.trace_start"() <{level = 10 : i32, message = "chw,cwo->cho"}> : () -> ()
    %cst_14 = arith.constant dense<0.000000e+00> : vector<4x4x4xf32>
    %26 = tpu.matmul %10, %25, %cst_14 {dimension_numbers = #tpu.dot_dimension_numbers<[2], [1], [1], [2], [0, 0, 0, 1, 1, 2], [0], [0]>} : vector<4x4x16xf32>, vector<4x16x4xf32>, vector<4x4x4xf32> -> vector<4x4x4xf32>
    "tpu.trace_stop"() : () -> ()
    %c0_15 = arith.constant 0 : index
    %c0_16 = arith.constant 0 : index
    %c0_17 = arith.constant 0 : index
    %c0_18 = arith.constant 0 : index
    %27 = vector.load %arg3[%c0_15, %c0_16, %c0_17, %c0_18] : memref<1x4x4x4xf32, #tpu.memory_space<vmem>>, vector<1x4x4x4xf32>
    %28 = vector.shape_cast %27 : vector<1x4x4x4xf32> to vector<4x4x4xf32>
    %29 = vector.shape_cast %26 : vector<4x4x4xf32> to vector<1x4x4x4xf32>
    tpu.vector_store %arg3[%c0_15, %c0_16, %c0_17, %c0_18], %29 {strides = array<i32>} : memref<1x4x4x4xf32, #tpu.memory_space<vmem>>, vector<1x4x4x4xf32>,
    return
  }
  func.func @transform_0(%arg0: i32, %arg1: i32) -> (i32, i32, i32, i32) {
    %c0_i32 = arith.constant 0 : i32
    %c0_i32_0 = arith.constant 0 : i32
    %c0_i32_1 = arith.constant 0 : i32
    return %arg0, %arg1, %c0_i32, %c0_i32_0 : i32, i32, i32, i32
  }
  func.func @transform_1(%arg0: i32, %arg1: i32) -> (i32, i32, i32, i32) {
    %c0_i32 = arith.constant 0 : i32
    %c0_i32_0 = arith.constant 0 : i32
    %c0_i32_1 = arith.constant 0 : i32
    return %arg0, %arg1, %c0_i32, %c0_i32_0 : i32, i32, i32, i32
  }
}

</mosaic_0001>

<bundles_post_ra>
// kernel: tpu_custom_call.1
= control target key start
LH: loop header
LB: loop body
LE: loop exit
PB: predicated region body
PF: predicated region fallthrough
CT: control target
= control target key end

     0   :  { %6 = vsyncpa [#allocation3], 0  ;;  %s1133_s0 = inlined_call_operand.hbm [shape: f32[2,4,16,16], index: 0, kind: input, shape index: {}]   ;;  %s1134_s1 = inlined_call_operand.hbm [shape: f32[2,4,4,4], index: 1, kind: output, shape index: {}]  }
   0x1   :  { %8 = vsyncpa [#allocation3 + $0x1], 0 }
   0x2   :  { %9 = vsyncpa [#allocation4], 0 }
   0x3   :  { %11 = vsyncpa [#allocation4 + $0x1], 0  ;;  %s915_s6 = smov 0   ;;  %s917_s7 = smov 0  }
   0x4   :  { %s919_s8 = smov 0   ;;  %s921_s9 = smov 0  }
   0x5   :  { %s923_s10 = smov 0   ;;  %s925_s11 = smov 0  }
   0x6 LB: > { %s615_s12 = sadd.s32 4294967295, %s893_s11   ;;  %s616_s13 = sadd.s32 4294967294, %s893_s11   ;;  %s893_s11 = sphi %s925_s11, %s17_s11   ;;  %s889_s10 = sphi %s923_s10, %s1151_s10   ;;  %s885_s9 = sphi %s921_s9, %s1150_s9   ;;  %s881_s8 = sphi %s919_s8, %s1149_s8   ;;  %s877_s7 = sphi %s917_s7, %s1148_s7   ;;  %s873_s6 = sphi %s915_s6, %s1147_s6  }
   0x7   : > { %s29_s14 = sadd.s32 1, %s889_s10  ;;  %s38_s15 = sadd.s32 1, %s881_s8 }
   0x8   : > { %p31_p0 = scmp.ge.s32.totalorder %s29_s14, 2  ;;  %p45_p1 = scmp.ne.s32.totalorder %s881_s8, %s877_s7 }
   0x9   : > { %p46_p2 = scmp.eq.s32.totalorder %s893_s11, 0  ;;  %p51_p3 = scmp.ne.s32.totalorder %s877_s7, %s873_s6 }
   0xa   : > { %s1153_s14 = smov (%p31_p0, %s29_s14), 0  ;;  %p52_p5 = scmp.eq.s32.totalorder %s615_s12, 0 }
   0xb   : > { %p956_p4 = por %p46_p2, %p45_p1  ;;  %s33_s17 = ssub.s32 %s889_s10, %s1153_s14 }
   0xc   : > { %p77_p6 = scmp.eq.s32.totalorder %s615_s12, 1  ;;  %p36_p7 = scmp.eq.s32.totalorder %s33_s17, 0 }
   0xd   : > { %p962_p8 = por %p52_p5, %p51_p3  ;;  %p83_p10 = scmp.eq.s32.totalorder %s616_s13, 1 }
   0xe   : > { %p966_p9 = por %p77_p6, %p45_p1  ;;  %p723_p13 = scmp.lt.s32.totalorder %s893_s11, 2 }
   0xf   : > { %s971_s20 = scalar_select %p36_p7, %s881_s8, %s38_s15  }
  0x10   : > { %s1138_s19 = scalar_select %p966_p9, 1, 0 }
  0x11   : > { %p973_p11 = por %p83_p10, %p51_p3  ;;  %s103_s22 = sand.u32 1, %s881_s8  }
  0x12   : > { %s619_s23 = sshll.u32 %s103_s22, 6  ;;  %s657_s24 = sshll.u32 %s889_s10, 10 }
  0x13   : > { %s1139_s21 = scalar_select %p973_p11, 1, 0 }
  0x14   : > { %s984_s27 = scalar_lea.hbm %s1133_s0, %s657_s24  ;;  %s107_s28 = scalar_lea.vmem [#allocation2], %s619_s23 }
  0x15   : > { %s117_s29 = sshll.u32 %s107_s28, 4  ;;  %p990_p0 = pnand %p723_p13, %p956_p4  ;;  %s986_s29 = int_to_ptr.vmem [resolvable:$true] %s117_s29 }
  0x16   : > { %s995_s2 = scalar_lea.sflag [#allocation3], %s103_s22  ;;  %s781_s3 = scalar_lea.hbm %s984_s27, 1024 }
  0x17   : > { %p782_p2 = scmp.ne.s32.totalorder %s984_s27, %s781_s3  ;;  %p783_p3 = pneg %p990_p0 }
  0x18   : > { %s786_s12 = scalar_lea.hbm %s1133_s0, 2048  ;;  %p787_p4 = scmp.lt.u32.totalorder %s984_s27, %s1133_s0 }
  0x19   : > { %p784_p5 = pnand %p783_p3, %p782_p2  ;;  %p788_p7 = scmp.lt.u32.totalorder %s786_s12, %s781_s3 }
  0x1a   : > { %p790_p13 = scmp.lt.u32.totalorder %s781_s3, %s984_s27 }
  0x1b   : > { %p785_p6 = pneg %p784_p5  ;;  %p789_p10 = por %p788_p7, %p787_p4 }
  0x1d   : > { %p791_p12 = por %p790_p13, %p789_p10 }
  0x1f   : > { %p792_p1 = pnand %p791_p12, %p785_p6 }
  0x21   : > { %795 = shalt.err (!%p792_p1)
}
  0x22   : > { %s796_s16 = scalar_lea.vmem %s986_s29, 1024  ;;  %s895_s17 = smov [#allocation2]  }
  0x23   : > { %p797_p2 = scmp.ne.s32.totalorder %s986_s29, %s796_s16  ;;  %s801_s22 = sshll.u32 %s895_s17, 4  ;;  %s802_s22 = int_to_ptr.vmem [resolvable:$false] %s801_s22 }
  0x24   : > { %s803_s23 = scalar_lea.vmem %s802_s22, 2048  ;;  %p804_p9 = scmp.lt.s32.totalorder %s986_s29, %s802_s22 }
  0x25   : > { %p799_p5 = pnand %p797_p2, %p783_p3  ;;  %p805_p4 = scmp.lt.s32.totalorder %s803_s23, %s796_s16 }
  0x27   : > { %p800_p11 = pneg %p799_p5  ;;  %p806_p7 = por %p805_p4, %p804_p9 }
  0x29   : > { %p807_p10 = pnand %p806_p7, %p800_p11 }
  0x2b   : > { %810 = shalt.err (!%p807_p10)
}
  0x2c   : > { %s896_s24 = smov 128   ;;  %s897_s25 = smov 8  }
  0x2d   : > { %718 = dma.hbm_to_vmem [thread:$0]  (!%p990_p0), %s984_s27, 1024, %s986_s29, %s995_s2, %s896_s24, %s896_s24, %s897_s25  }
  0x2e   : > { %p125_p12 = scmp.lt.s32.totalorder %s893_s11, 3  ;;  %p1141_p1 = scmp.ge.s32.totalorder %s893_s11, 1 }
  0x30   : > { %p126_p3 = pnand %p1141_p1, %p125_p12 }
  0x31   : > { %s1027_s26 = sand.u32 (!%p126_p3), 1, %s877_s7  }
  0x32   : > { %129 = sbr.rel (%p126_p3) target bundleno = 304 (0x130), region = 24  ;;  %s623_s28 = sshll.u32 (!%p126_p3), %s1027_s26, 6 }
  0x33   : > { %s132_s3 = scalar_lea.sflag (!%p126_p3), [#allocation3], %s1027_s26  ;;  %s1031_s4 = scalar_lea.vmem (!%p126_p3), [#allocation2], %s623_s28 }
  0x39   : > { %864 = dma.done.wait (%p962_p8), %s132_s3, 1024  }
  0x3a   : > { %866 = vsyncadd (%p962_p8), %s132_s3, 4294966272  ;;  %v199_v0 = vlaneseq  ;;  %v898_v1 = vmov 0.0|0.0   ;;  %vm899_vm0 = vmmov 0   ;;  %v900_v4 = vmov 0.0   ;;  %s624_s18 = sshll.u32 %s1027_s26, 4  ;;  %s658_s30 = sshll.u32 %s885_s9, 8 }
  0x3b   : > { %699 = vmatprep.subr.bf16.mxu0 %v898_v1  ;;  %702 = vmatprep.subr.bf16.mxu1 %v898_v1  ;;  %vm214_vm2 = vcmask 130048   ;;  %v156_v8 = vld [vmem:[%s1031_s4] ss:$4 sm:$0xf]  ;;  %v901_v22 = vmov 0.0625|0.0625   ;;  %s1082_s12 = scalar_lea.hbm %s1134_s1, %s658_s30 }
  0x3c   : > { %v200_v2 = vshrl.u32 %v199_v0, 7  ;;  %v203_v3 = vand.u32 127, %v199_v0  ;;  %675 = vmatprep.mubr.msk.f32.mxu0 %vm899_vm0, %v900_v4  ;;  %682 = vmatprep.mubr.msk.f32.mxu1 %vm899_vm0, %v900_v4  ;;  %v628_v9 = vld [vmem:[%s1031_s4 + $0x1] ss:$4 sm:$0xf]  ;;  %vm507_vm9 = vcmask 27648  }
  0x3d   : > { %v171_v10 = vadd.f32 %v628_v9, %v156_v8  ;;  %v632_v11 = vld [vmem:[%s1031_s4 + $0x2] ss:$4 sm:$0xf]  ;;  %v636_v12 = vld [vmem:[%s1031_s4 + $0x3] ss:$4 sm:$0xf] }
  0x3e   : > { %v201_v5 = vadd.s32 8, %v200_v2  ;;  %v204_v6 = vmul.u32 4, %v203_v3  ;;  %v625_v13 = vld [vmem:[%s1031_s4 + $0x10] ss:$4 sm:$0xf]  ;;  %s153_s27 = scalar_lea.vmem [#allocation5], %s624_s18 }
  0x3f   : > { %v629_v14 = vld [vmem:[%s1031_s4 + $0x11] ss:$4 sm:$0xf]  ;;  %v183_v15 = vadd.f32 %v632_v11, %v171_v10  ;;  %v633_v17 = vld [vmem:[%s1031_s4 + $0x12] ss:$4 sm:$0xf] }
  0x40   : > { %vm205_vm1 = vcmp.ge.s32.totalorder %v200_v2, %v204_v6  ;;  %v207_v7 = vadd.s32 4, %v204_v6  ;;  %vm206_vm3 = vcmp.ge.s32.totalorder %v201_v5, %v204_v6  ;;  %v172_v16 = vadd.f32 %v629_v14, %v625_v13  ;;  %v637_v18 = vld [vmem:[%s1031_s4 + $0x13] ss:$4 sm:$0xf]  ;;  %s528_s29 = sshll.u32 %s153_s27, 4  ;;  %s513_s9 = scalar_lea.sflag [#allocation4], %s1027_s26  ;;  %s1076_s29 = int_to_ptr.vmem [resolvable:$true] %s528_s29 }
  0x41   : > { %v626_v20 = vld [vmem:[%s1031_s4 + $0x20] ss:$4 sm:$0xf]  ;;  %v630_v21 = vld [vmem:[%s1031_s4 + $0x21] ss:$4 sm:$0xf]  ;;  %v195_v23 = vadd.f32 %v636_v12, %v183_v15 }
  0x42   : > { %vm208_vm4 = vcmp.lt.s32.totalorder %v200_v2, %v207_v7  ;;  %vm209_vm5 = vcmp.lt.s32.totalorder %v201_v5, %v207_v7  ;;  %v184_v24 = vadd.f32 %v633_v17, %v172_v16  ;;  %v173_v25 = vadd.f32 %v630_v21, %v626_v20  ;;  %v634_v26 = vld [vmem:[%s1031_s4 + $0x22] ss:$4 sm:$0xf]  ;;  %v638_v27 = vld [vmem:[%s1031_s4 + $0x23] ss:$4 sm:$0xf] }
  0x43   : > { %vm210_vm6 = vmand %vm205_vm1, %vm208_vm4  ;;  %v627_v28 = vld [vmem:[%s1031_s4 + $0x30] ss:$4 sm:$0xf]  ;;  %v631_v29 = vld [vmem:[%s1031_s4 + $0x31] ss:$4 sm:$0xf] }
  0x44   : > { %vm211_vm7 = vmand %vm206_vm3, %vm209_vm5  ;;  %v196_v30 = vadd.f32 %v637_v18, %v184_v24  ;;  %v185_v31 = vadd.f32 %v634_v26, %v173_v25  ;;  %v174_v32 = vadd.f32 %v631_v29, %v627_v28  ;;  %v635_v33 = vld [vmem:[%s1031_s4 + $0x32] ss:$4 sm:$0xf]  ;;  %v639_v34 = vld [vmem:[%s1031_s4 + $0x33] ss:$4 sm:$0xf] }
  0x45   : > { %vm1047_vm8 = vmpackc.low %vm211_vm7, %vm210_vm6  ;;  %s811_s13 = scalar_lea.vmem %s1076_s29, 256  ;;  %p1144_p9 = scmp.ne.s32.totalorder %s1138_s19, 0 }
  0x46   : > { %701 = vmatpush3.bf16.msk.msra.mxu0 %vm1047_vm8, %v901_v22  ;;  %704 = vmatpush3.bf16.msk.msra.mxu1 %vm1047_vm8, %v901_v22  ;;  %v197_v35 = vadd.f32 %v638_v27, %v185_v31  ;;  %v186_v36 = vadd.f32 %v635_v33, %v174_v32  ;;  %p812_p8 = scmp.ne.s32.totalorder %s1076_s29, %s811_s13  ;;  %s902_s15 = smov [#allocation5]  }
  0x47   : > { %705 = vmatprep.subr.bf16.mxu0 %v898_v1  ;;  %708 = vmatprep.subr.bf16.mxu1 %v898_v1  ;;  %s815_s16 = sshll.u32 %s902_s15, 4  ;;  %s816_s16 = int_to_ptr.vmem [resolvable:$false] %s815_s16 }
  0x48   : > { %v198_v37 = vadd.f32 %v639_v34, %v186_v36  ;;  %p813_p11 = pnand %p812_p8, %p1144_p9  ;;  %s817_s17 = scalar_lea.vmem %s816_s16, 512 }
  0x49   : > { %676 = vmatmul.mubr.msk.f32.vlgmr.msra.gmra.mrb[0].mxu0 %vm214_vm2, %v195_v23  ;;  %683 = vmatmul.mubr.msk.f32.vlgmr.msra.gmra.mrb[0].mxu1 %vm214_vm2, %v196_v30  ;;  %p818_p6 = scmp.lt.s32.totalorder %s1076_s29, %s816_s16  ;;  %p819_p13 = scmp.lt.s32.totalorder %s817_s17, %s811_s13 }
  0x4a   : > { %707 = vmatpush3.bf16.msk.msra.mxu0 %vm1047_vm8, %v901_v22  ;;  %710 = vmatpush3.bf16.msk.msra.mxu1 %vm1047_vm8, %v901_v22  ;;  %p814_p0 = pneg %p813_p11 }
  0x4b   : > { %689 = vmatprep.mubr.msk.f32.mxu0 %vm899_vm0, %v900_v4  ;;  %696 = vmatprep.mubr.msk.f32.mxu1 %vm899_vm0, %v900_v4  ;;  %p820_p2 = por %p819_p13, %p818_p6 }
  0x4d   : > { %690 = vmatmul.mubr.msk.f32.vlgmr.msra.gmra.mrb[2].mxu0 %vm214_vm2, %v197_v35  ;;  %697 = vmatmul.mubr.msk.f32.vlgmr.msra.gmra.mrb[2].mxu1 %vm214_vm2, %v198_v37  ;;  %p821_p5 = pnand %p820_p2, %p814_p0 }
 0x11c   : > { %v284_v38 = vpop.f32.mrb[0].mxu0  ;;  %v357_v39 = vpop.f32.mrb[0].mxu1 }
 0x11d   : > { %508 = vst.msk [vmem:[%s153_s27] sm:$0xf] %vm507_vm9, %v284_v38  ;;  %v677_v40 = vpop.f32.mrb[1].mxu0  ;;  %509 = vst.msk [vmem:[%s153_s27 + $0x4] sm:$0xf] %vm507_vm9, %v357_v39  ;;  %v684_v41 = vpop.f32.mrb[1].mxu1 }
 0x120   : > { %v430_v42 = vpop.f32.mrb[2].mxu0  ;;  %v503_v43 = vpop.f32.mrb[2].mxu1 }
 0x121   : > { %510 = vst.msk [vmem:[%s153_s27 + $0x8] sm:$0xf] %vm507_vm9, %v430_v42  ;;  %v691_v44 = vpop.f32.mrb[3].mxu0  ;;  %511 = vst.msk [vmem:[%s153_s27 + $0xc] sm:$0xf] %vm507_vm9, %v503_v43  ;;  %v698_v45 = vpop.f32.mrb[3].mxu1 }
 0x122   : > { %824 = shalt.err (!%p821_p5)
}
 0x123   : > { %s825_s22 = scalar_lea.hbm %s1082_s12, 256  ;;  %s829_s25 = scalar_lea.hbm %s1134_s1, 512 }
 0x124   : > { %p826_p4 = scmp.ne.s32.totalorder %s1082_s12, %s825_s22  ;;  %p830_p12 = scmp.lt.u32.totalorder %s1082_s12, %s1134_s1 }
 0x125   : > { %p831_p1 = scmp.lt.u32.totalorder %s829_s25, %s825_s22  ;;  %p833_p8 = scmp.lt.u32.totalorder %s825_s22, %s1082_s12 }
 0x126   : > { %p827_p7 = pnand %p826_p4, %p1144_p9 }
 0x127   : > { %p832_p3 = por %p831_p1, %p830_p12 }
 0x128   : > { %p828_p10 = pneg %p827_p7 }
 0x129   : > { %p834_p11 = por %p833_p8, %p832_p3 }
 0x12b   : > { %p835_p0 = pnand %p834_p11, %p828_p10 }
 0x12d   : > { %838 = shalt.err (!%p835_p0)
}
 0x12e   : > { %s903_s4 = smov 64   ;;  %s904_s18 = smov 4  }
 0x12f   : > { %713 = dma.vmem_to_hbm [thread:$0]  (%p1144_p9), %s1076_s29, 256, %s1082_s12, %s513_s9, %s903_s4, %s903_s4, %s904_s18  }
 0x130 PF: > { %s543_s27 = sand.u32 1, %s873_s6   ;;  %p1145_p6 = scmp.ne.s32.totalorder %s1139_s21, 0 }
 0x131   : > { %p1146_p13 = scmp.ge.s32.totalorder %s893_s11, 2  ;;  %s544_s30 = scalar_lea.sflag [#allocation4], %s543_s27 }
 0x133   : > { %p720_p2 = pnand %p1146_p13, %p1145_p6 }
 0x135   : > { %868 = dma.done.wait (!%p720_p2), %s544_s30, 256  }
 0x136   : > { %870 = vsyncadd (!%p720_p2), %s544_s30, 4294967040  ;;  %s17_s11 = sadd.s32 1, %s893_s11   ;;  %s1147_s6 = smov %s877_s7 }
 0x137   : > { %p14_p5 = scmp.ge.s32.totalorder %s17_s11, 4   ;;  %s1148_s7 = smov %s881_s8 }
 0x138   : > { %s1149_s8 = smov %s971_s20  ;;  %s1150_s9 = smov %s889_s10 }
 0x139   : > { %s1151_s10 = smov %s1153_s14  ;;  %16 = sbr.rel (!%p14_p5) target bundleno = 6 (0x6), region = 84 }
 0x140   :  { %549 = vsyncpa [#allocation3], 1 }
 0x141   :  { %551 = vsyncpa [#allocation3 + $0x1], 1 }
 0x142   :  { %552 = vsyncpa [#allocation4], 1 }
 0x143   :  { %554 = vsyncpa [#allocation4 + $0x1], 1 }

</bundles_post_ra>
